<compile_context>
chip_gen: v7x
topology: tpu7x:2x2x1
jax: 0.10.0
libtpu: 0.0.40
codegen_flags: <defaults>
</compile_context>

<pallas_src>
import jax
import jax.numpy as jnp
from jax import lax
from jax.experimental import pallas as pl
from jax.experimental.pallas import tpu as pltpu


def _round_up(x, m):
    return (x + m - 1) // m * m


def _vmem_limit_bytes():
    # Derive the scoped-VMEM limit from the chip instead of hard-coding 32 MiB:
    # ~96 MiB on v5e/v6e (128 MiB physical), ~48 MiB on v7x (64 MiB physical).
    try:
        cap = int(pltpu.get_tpu_info().vmem_capacity_bytes)
    except Exception:
        cap = 64 * 1024 * 1024
    return max(32 * 1024 * 1024, min(cap * 3 // 4, 100 * 1024 * 1024))


def _make_kernel(*, W, Cin, M, batch_tile, p_left, ppad, negative_slope,
                 compute_dtype):
    interior = p_left + W          # staging lane index of original pixel (0, 0)

    def kernel(x_ref, w_ref, b_ref, o_ref, xs_ref, r_ref):
        # x_ref : (batch_tile, Cin, M)        input, original dtype (no wrapper pad/cast)
        # w_ref : (cout_tile, 9*Cin)          weights, rows ordered (dy, dx, cin)
        # b_ref : (cout_tile, 1)              f32 bias
        # o_ref : (batch_tile, cout_tile, M)  lane-dense NCHW-native output
        # xs_ref: (Cin, ppad)                 row-padded staging buffer (scratch)
        # r_ref : (9*Cin, batch_tile*M)       im2col buffer (scratch)

        # Build the im2col buffer only on the first Cout block; the scratch is
        # VMEM-resident and reused across the inner "arbitrary" Cout axis.
        @pl.when(pl.program_id(1) == 0)
        def _build_im2col():
            col = lax.broadcasted_iota(jnp.int32, (1, M), 1) % W
            m_left = (col >= 1).astype(compute_dtype)        # zero dx=0 taps at ox==0
            m_right = (col <= W - 2).astype(compute_dtype)   # zero dx=2 taps at ox==W-1

            # Zero halo lanes (left pad + top zero row, bottom zero row + tail) once;
            # the per-image interior store below never touches them.
            xs_ref[:, :interior] = jnp.zeros((Cin, interior), compute_dtype)
            xs_ref[:, interior + M:] = jnp.zeros((Cin, ppad - interior - M),
                                                 compute_dtype)

            for b in range(batch_tile):
                # In-kernel cast: HBM holds the original dtype; the optional bf16
                # cast happens here in VMEM (no extra HBM round trip).
                xs_ref[:, interior:interior + M] = x_ref[b].astype(compute_dtype)
                for dy in range(3):
                    for dx in range(3):
                        t = 3 * dy + dx
                        s = p_left + dy * W + dx - 1
                        tap = xs_ref[:, s:s + M]              # (Cin, M) lane-shifted
                        if dx == 0:
                            tap = tap * m_left
                        elif dx == 2:
                            tap = tap * m_right
                        r_ref[t * Cin:(t + 1) * Cin, b * M:(b + 1) * M] = tap

        # Single fat MXU matmul: K = 9*Cin, lanes = batch_tile*M, f32 accumulation.
        acc = jnp.dot(w_ref[...], r_ref[...], preferred_element_type=jnp.float32)
        acc = acc + b_ref[...]                                 # bias broadcast
        act = jnp.where(acc >= 0, acc, negative_slope * acc)   # LeakyReLU(0.01)
        for b in range(batch_tile):
            o_ref[b] = act[:, b * M:(b + 1) * M].astype(o_ref.dtype)

    return kernel


def conv2d_and_relu(x_nchw, weight_oihw, bias, *, negative_slope=0.01,
                    compute_dtype=None, out_dtype=None,
                    batch_tile=None, cout_tile=None):
    """Equivalent of Conv2DandReLU(in_ch, out_ch, activation='lrelu', stride=1).

    x_nchw:        (N, Cin, H, W)
    weight_oihw:   (Cout, Cin, 3, 3)   (PyTorch Conv2d weight layout)
    bias:          (Cout,)
    compute_dtype: dtype for the matmul operands (e.g. jnp.bfloat16 on v6e/v7x);
                   accumulation is always float32.  Default x.dtype (v5e-friendly).
    out_dtype:     output dtype (default x.dtype); pass jnp.bfloat16 to halve the
                   output writeback when the consumer accepts it.
    batch_tile:    images folded into one grid step (lane-dim widening).
    cout_tile:     output-channel tile (multiple of 8, or Cout).
    """
    N, Cin, H, W = x_nchw.shape
    Cout = weight_oihw.shape[0]
    if compute_dtype is None:
        compute_dtype = x_nchw.dtype
    if out_dtype is None:
        out_dtype = x_nchw.dtype
    M = H * W

    # Batch folding: widen the matmul lane dim, but keep >= 2 steps on the
    # "parallel" axis so both v7x TensorCores get work.
    if batch_tile is None:
        batch_tile = 1
        for cand in range(1, N + 1):
            if N % cand != 0:
                continue
            r_bytes = cand * M * 9 * Cin * jnp.dtype(compute_dtype).itemsize
            if r_bytes > 8 * 1024 * 1024:
                continue
            if N // cand >= 2 or N == 1:
                batch_tile = cand
    assert N % batch_tile == 0, "batch_tile must divide N"

    if cout_tile is None:
        cout_tile = Cout
    assert Cout % cout_tile == 0, "cout_tile must divide Cout"
    assert cout_tile == Cout or cout_tile % 8 == 0, "cout_tile must be a multiple of 8"

    # Staging layout: left pad so the interior copy lands lane-aligned and all 9
    # tap offsets are non-negative; round total width up to a multiple of 128.
    p_left = (-W) % 128
    if p_left == 0:
        p_left = 128
    ppad = _round_up(p_left + (H + 2) * W + 1, 128)

    # No wrapper-side pad / cast of the activation — just a free reshape.
    x_flat = x_nchw.reshape(N, Cin, M)

    # (Cout, Cin, 3, 3) -> (Cout, 9*Cin), rows ordered (dy, dx, cin) to match R.
    w2 = jnp.transpose(weight_oihw, (0, 2, 3, 1)).reshape(Cout, 9 * Cin)
    w2 = w2.astype(compute_dtype)
    b2 = bias.reshape(Cout, 1).astype(jnp.float32)

    kernel = _make_kernel(W=W, Cin=Cin, M=M, batch_tile=batch_tile,
                          p_left=p_left, ppad=ppad,
                          negative_slope=negative_slope,
                          compute_dtype=compute_dtype)

    def _isz(d):
        return jnp.dtype(d).itemsize

    cost = pl.CostEstimate(
        flops=2 * N * Cout * 9 * Cin * M,
        transcendentals=0,
        bytes_accessed=(x_flat.size * _isz(x_flat.dtype)
                        + w2.size * _isz(w2.dtype)
                        + b2.size * 4
                        + N * Cout * M * _isz(out_dtype)),
    )

    grid = (N // batch_tile, Cout // cout_tile)

    out_flat = pl.pallas_call(
        kernel,
        out_shape=jax.ShapeDtypeStruct((N, Cout, M), out_dtype),
        grid_spec=pltpu.PrefetchScalarGridSpec(
            num_scalar_prefetch=0,
            grid=grid,
            in_specs=[
                pl.BlockSpec((batch_tile, Cin, M), lambda nb, j: (nb, 0, 0)),
                # TODO(synk): at scale, pipeline_mode=pl.Buffered(1) on these two
                # constant blocks reclaims the wasted second buffer (v7x VMEM).
                pl.BlockSpec((cout_tile, 9 * Cin), lambda nb, j: (j, 0)),
                pl.BlockSpec((cout_tile, 1), lambda nb, j: (j, 0)),
            ],
            out_specs=pl.BlockSpec((batch_tile, cout_tile, M),
                                   lambda nb, j: (nb, j, 0)),
            scratch_shapes=[
                pltpu.VMEM((Cin, ppad), compute_dtype),               # staging
                pltpu.VMEM((9 * Cin, batch_tile * M), compute_dtype),  # im2col
            ],
        ),
        compiler_params=pltpu.CompilerParams(
            dimension_semantics=("parallel", "arbitrary"),
            vmem_limit_bytes=_vmem_limit_bytes(),
        ),
        cost_estimate=cost,
    )(x_flat, w2, b2)

    return out_flat.reshape(N, Cout, H, W)


def _reference(x_nchw, weight_oihw, bias, negative_slope=0.01):
    y = lax.conv_general_dilated(
        x_nchw, weight_oihw, window_strides=(1, 1), padding=((1, 1), (1, 1)),
        dimension_numbers=("NCHW", "OIHW", "NCHW"))
    y = y + bias.reshape(1, -1, 1, 1)
    return jnp.where(y >= 0, y, negative_slope * y)


if __name__ == "__main__":
    key = jax.random.PRNGKey(0)
    k_x, k_w, k_b = jax.random.split(key, 3)

    N, Cin, Cout, H, W = 2, 4, 16, 16, 16
    x = jax.random.normal(k_x, (N, Cin, H, W), dtype=jnp.float32)
    weight = jax.random.normal(k_w, (Cout, Cin, 3, 3), dtype=jnp.float32) * 0.1
    bias = jax.random.normal(k_b, (Cout,), dtype=jnp.float32) * 0.1

    ref = _reference(x, weight, bias)

    # 1) Default: f32 compute, batch_tile heuristic keeps 2 parallel grid steps.
    out = jax.block_until_ready(conv2d_and_relu(x, weight, bias))
    assert out.shape == (N, Cout, H, W)
    assert jnp.allclose(out, ref, atol=1e-4, rtol=1e-4)

    # 2) Batch folding: both images in one fat matmul (one grid step).
    out_folded = jax.block_until_ready(conv2d_and_relu(x, weight, bias, batch_tile=2))
    assert jnp.allclose(out_folded, ref, atol=1e-4, rtol=1e-4)

    # 3) Cout tiling (grid = (2, 2)): im2col buffer built once per batch block
    #    (pl.when) and reused across the "arbitrary" Cout axis.
    out_ct = jax.block_until_ready(conv2d_and_relu(x, weight, bias, cout_tile=8))
    assert jnp.allclose(out_ct, ref, atol=1e-4, rtol=1e-4)

    # 4) bf16 compute + bf16 output (v6e/v7x MXU path), f32 accumulation.
    out_bf16 = jax.block_until_ready(conv2d_and_relu(
        x, weight, bias, compute_dtype=jnp.bfloat16, out_dtype=jnp.bfloat16,
        batch_tile=2))
    assert out_bf16.dtype == jnp.bfloat16
    assert jnp.allclose(out_bf16.astype(jnp.float32), ref, atol=5e-2, rtol=5e-2)

    print("KERNEL_OK")
</pallas_src>

<mosaic_0001>
module attributes {stable_mosaic.version = 11 : i64} {
  func.func @kernel(%arg0: i32, %arg1: i32, %arg2: memref<1x4x256xf32, #tpu.memory_space<vmem>>, %arg3: memref<16x36xf32, #tpu.memory_space<vmem>>, %arg4: memref<16x1xf32, #tpu.memory_space<vmem>>, %arg5: memref<1x16x256xf32, #tpu.memory_space<vmem>>, %arg6: memref<4x512xf32, #tpu.memory_space<vmem>>, %arg7: memref<36x256xf32, #tpu.memory_space<vmem>>) attributes {dimension_semantics = [#tpu.dimension_semantics<parallel>, #tpu.dimension_semantics<arbitrary>], iteration_bounds = array<i64: 2, 1>, scalar_prefetch = 0 : i64, scratch_operands = 2 : i64, tpu.core_type = #tpu.core_type<tc>, window_params = [{transform_indices = @transform_0, window_bounds = array<i64: 1, 4, 256>}, {transform_indices = @transform_1, window_bounds = array<i64: 16, 36>}, {transform_indices = @transform_2, window_bounds = array<i64: 16, 1>}, {transform_indices = @transform_3, window_bounds = array<i64: 1, 16, 256>}]} {
    %c0_i32 = arith.constant 0 : i32
    %0 = arith.cmpi eq, %arg1, %c0_i32 : i32
    %1 = arith.extui %0 : i1 to i32
    %c0_i32_0 = arith.constant 0 : i32
    %2 = arith.cmpi ne, %1, %c0_i32_0 : i32
    scf.if %2 {
      %17 = tpu.iota {dimensions = array<i32: 1>} : vector<1x256xi32>
      %c16_i32 = arith.constant 16 : i32
      %c0_i32_11 = arith.constant 0 : i32
      %18 = arith.cmpi eq, %c16_i32, %c0_i32_11 : i32
      %c1_i32 = arith.constant 1 : i32
      %19 = arith.select %18, %c1_i32, %c16_i32 : i32
      %20 = vector.broadcast %19 : i32 to vector<1x256xi32>
      %21 = arith.remsi %17, %20 : vector<1x256xi32>
      %c0_i32_12 = arith.constant 0 : i32
      %22 = vector.broadcast %c0_i32_12 : i32 to vector<1x256xi32>
      %23 = arith.cmpi ne, %21, %22 : vector<1x256xi32>
      %c0_i32_13 = arith.constant 0 : i32
      %24 = vector.broadcast %c0_i32_13 : i32 to vector<1x256xi32>
      %25 = arith.cmpi slt, %21, %24 : vector<1x256xi32>
      %c0_i32_14 = arith.constant 0 : i32
      %26 = arith.cmpi slt, %19, %c0_i32_14 : i32
      %27 = vector.broadcast %26 : i1 to vector<1x256xi1>
      %28 = vector.broadcast %27 : vector<1x256xi1> to vector<1x256xi1>
      %29 = arith.xori %25, %28 : vector<1x256xi1>
      %30 = arith.andi %29, %23 : vector<1x256xi1>
      %31 = vector.broadcast %19 : i32 to vector<1x256xi32>
      %32 = arith.addi %21, %31 : vector<1x256xi32>
      %33 = arith.select %30, %32, %21 : vector<1x256xi1>, vector<1x256xi32>
      %c1_i32_15 = arith.constant 1 : i32
      %34 = vector.broadcast %c1_i32_15 : i32 to vector<1x256xi32>
      %35 = arith.cmpi sge, %33, %34 : vector<1x256xi32>
      %36 = arith.extui %35 : vector<1x256xi1> to vector<1x256xi32>
      %37 = arith.sitofp %36 : vector<1x256xi32> to vector<1x256xf32>
      %c14_i32 = arith.constant 14 : i32
      %38 = vector.broadcast %c14_i32 : i32 to vector<1x256xi32>
      %39 = arith.cmpi sle, %33, %38 : vector<1x256xi32>
      %40 = arith.extui %39 : vector<1x256xi1> to vector<1x256xi32>
      %41 = arith.sitofp %40 : vector<1x256xi32> to vector<1x256xf32>
      %cst_16 = arith.constant 0.000000e+00 : f32
      %42 = vector.broadcast %cst_16 : f32 to vector<4x128xf32>
      %c0_17 = arith.constant 0 : index
      %c0_18 = arith.constant 0 : index
      %43 = vector.load %arg6[%c0_17, %c0_18] : memref<4x512xf32, #tpu.memory_space<vmem>>, vector<4x128xf32>
      tpu.vector_store %arg6[%c0_17, %c0_18], %42 {strides = array<i32>} : memref<4x512xf32, #tpu.memory_space<vmem>>, vector<4x128xf32>,
      %cst_19 = arith.constant 0.000000e+00 : f32
      %44 = vector.broadcast %cst_19 : f32 to vector<4x128xf32>
      %c0_20 = arith.constant 0 : index
      %c384 = arith.constant 384 : index
      %45 = vector.load %arg6[%c0_20, %c384] : memref<4x512xf32, #tpu.memory_space<vmem>>, vector<4x128xf32>
      tpu.vector_store %arg6[%c0_20, %c384], %44 {strides = array<i32>} : memref<4x512xf32, #tpu.memory_space<vmem>>, vector<4x128xf32>,
      %c0_21 = arith.constant 0 : index
      %c0_22 = arith.constant 0 : index
      %c0_23 = arith.constant 0 : index
      %46 = vector.load %arg2[%c0_21, %c0_22, %c0_23] : memref<1x4x256xf32, #tpu.memory_space<vmem>>, vector<1x4x256xf32>
      %47 = vector.shape_cast %46 : vector<1x4x256xf32> to vector<4x256xf32>
      %c0_24 = arith.constant 0 : index
      %c128 = arith.constant 128 : index
      %48 = vector.load %arg6[%c0_24, %c128] : memref<4x512xf32, #tpu.memory_space<vmem>>, vector<4x256xf32>
      tpu.vector_store %arg6[%c0_24, %c128], %47 {strides = array<i32>} : memref<4x512xf32, #tpu.memory_space<vmem>>, vector<4x256xf32>,
      %c0_25 = arith.constant 0 : index
      %c111 = arith.constant 111 : index
      %49 = vector.load %arg6[%c0_25, %c111] : memref<4x512xf32, #tpu.memory_space<vmem>>, vector<4x256xf32>
      %50 = vector.broadcast %37 : vector<1x256xf32> to vector<4x256xf32>
      %51 = arith.mulf %49, %50 : vector<4x256xf32>
      %c0_26 = arith.constant 0 : index
      %c0_27 = arith.constant 0 : index
      %52 = vector.load %arg7[%c0_26, %c0_27] : memref<36x256xf32, #tpu.memory_space<vmem>>, vector<4x256xf32>
      tpu.vector_store %arg7[%c0_26, %c0_27], %51 {strides = array<i32>} : memref<36x256xf32, #tpu.memory_space<vmem>>, vector<4x256xf32>,
      %c0_28 = arith.constant 0 : index
      %c112 = arith.constant 112 : index
      %53 = vector.load %arg6[%c0_28, %c112] : memref<4x512xf32, #tpu.memory_space<vmem>>, vector<4x256xf32>
      %c4 = arith.constant 4 : index
      %c0_29 = arith.constant 0 : index
      %54 = vector.load %arg7[%c4, %c0_29] : memref<36x256xf32, #tpu.memory_space<vmem>>, vector<4x256xf32>
      tpu.vector_store %arg7[%c4, %c0_29], %53 {strides = array<i32>} : memref<36x256xf32, #tpu.memory_space<vmem>>, vector<4x256xf32>,
      %c0_30 = arith.constant 0 : index
      %c113 = arith.constant 113 : index
      %55 = vector.load %arg6[%c0_30, %c113] : memref<4x512xf32, #tpu.memory_space<vmem>>, vector<4x256xf32>
      %56 = vector.broadcast %41 : vector<1x256xf32> to vector<4x256xf32>
      %57 = arith.mulf %55, %56 : vector<4x256xf32>
      %c8 = arith.constant 8 : index
      %c0_31 = arith.constant 0 : index
      %58 = vector.load %arg7[%c8, %c0_31] : memref<36x256xf32, #tpu.memory_space<vmem>>, vector<4x256xf32>
      tpu.vector_store %arg7[%c8, %c0_31], %57 {strides = array<i32>} : memref<36x256xf32, #tpu.memory_space<vmem>>, vector<4x256xf32>,
      %c0_32 = arith.constant 0 : index
      %c127 = arith.constant 127 : index
      %59 = vector.load %arg6[%c0_32, %c127] : memref<4x512xf32, #tpu.memory_space<vmem>>, vector<4x256xf32>
      %60 = vector.broadcast %37 : vector<1x256xf32> to vector<4x256xf32>
      %61 = arith.mulf %59, %60 : vector<4x256xf32>
      %c12 = arith.constant 12 : index
      %c0_33 = arith.constant 0 : index
      %62 = vector.load %arg7[%c12, %c0_33] : memref<36x256xf32, #tpu.memory_space<vmem>>, vector<4x256xf32>
      tpu.vector_store %arg7[%c12, %c0_33], %61 {strides = array<i32>} : memref<36x256xf32, #tpu.memory_space<vmem>>, vector<4x256xf32>,
      %c0_34 = arith.constant 0 : index
      %c128_35 = arith.constant 128 : index
      %63 = vector.load %arg6[%c0_34, %c128_35] : memref<4x512xf32, #tpu.memory_space<vmem>>, vector<4x256xf32>
      %c16 = arith.constant 16 : index
      %c0_36 = arith.constant 0 : index
      %64 = vector.load %arg7[%c16, %c0_36] : memref<36x256xf32, #tpu.memory_space<vmem>>, vector<4x256xf32>
      tpu.vector_store %arg7[%c16, %c0_36], %63 {strides = array<i32>} : memref<36x256xf32, #tpu.memory_space<vmem>>, vector<4x256xf32>,
      %c0_37 = arith.constant 0 : index
      %c129 = arith.constant 129 : index
      %65 = vector.load %arg6[%c0_37, %c129] : memref<4x512xf32, #tpu.memory_space<vmem>>, vector<4x256xf32>
      %66 = vector.broadcast %41 : vector<1x256xf32> to vector<4x256xf32>
      %67 = arith.mulf %65, %66 : vector<4x256xf32>
      %c20 = arith.constant 20 : index
      %c0_38 = arith.constant 0 : index
      %68 = vector.load %arg7[%c20, %c0_38] : memref<36x256xf32, #tpu.memory_space<vmem>>, vector<4x256xf32>
      tpu.vector_store %arg7[%c20, %c0_38], %67 {strides = array<i32>} : memref<36x256xf32, #tpu.memory_space<vmem>>, vector<4x256xf32>,
      %c0_39 = arith.constant 0 : index
      %c143 = arith.constant 143 : index
      %69 = vector.load %arg6[%c0_39, %c143] : memref<4x512xf32, #tpu.memory_space<vmem>>, vector<4x256xf32>
      %70 = vector.broadcast %37 : vector<1x256xf32> to vector<4x256xf32>
      %71 = arith.mulf %69, %70 : vector<4x256xf32>
      %c24 = arith.constant 24 : index
      %c0_40 = arith.constant 0 : index
      %72 = vector.load %arg7[%c24, %c0_40] : memref<36x256xf32, #tpu.memory_space<vmem>>, vector<4x256xf32>
      tpu.vector_store %arg7[%c24, %c0_40], %71 {strides = array<i32>} : memref<36x256xf32, #tpu.memory_space<vmem>>, vector<4x256xf32>,
      %c0_41 = arith.constant 0 : index
      %c144 = arith.constant 144 : index
      %73 = vector.load %arg6[%c0_41, %c144] : memref<4x512xf32, #tpu.memory_space<vmem>>, vector<4x256xf32>
      %c28 = arith.constant 28 : index
      %c0_42 = arith.constant 0 : index
      %74 = vector.load %arg7[%c28, %c0_42] : memref<36x256xf32, #tpu.memory_space<vmem>>, vector<4x256xf32>
      tpu.vector_store %arg7[%c28, %c0_42], %73 {strides = array<i32>} : memref<36x256xf32, #tpu.memory_space<vmem>>, vector<4x256xf32>,
      %c0_43 = arith.constant 0 : index
      %c145 = arith.constant 145 : index
      %75 = vector.load %arg6[%c0_43, %c145] : memref<4x512xf32, #tpu.memory_space<vmem>>, vector<4x256xf32>
      %76 = vector.broadcast %41 : vector<1x256xf32> to vector<4x256xf32>
      %77 = arith.mulf %75, %76 : vector<4x256xf32>
      %c32 = arith.constant 32 : index
      %c0_44 = arith.constant 0 : index
      %78 = vector.load %arg7[%c32, %c0_44] : memref<36x256xf32, #tpu.memory_space<vmem>>, vector<4x256xf32>
      tpu.vector_store %arg7[%c32, %c0_44], %77 {strides = array<i32>} : memref<36x256xf32, #tpu.memory_space<vmem>>, vector<4x256xf32>,
    } else {
    }
    %c0 = arith.constant 0 : index
    %c0_1 = arith.constant 0 : index
    %3 = vector.load %arg3[%c0, %c0_1] : memref<16x36xf32, #tpu.memory_space<vmem>>, vector<16x36xf32>
    %c0_2 = arith.constant 0 : index
    %c0_3 = arith.constant 0 : index
    %4 = vector.load %arg7[%c0_2, %c0_3] : memref<36x256xf32, #tpu.memory_space<vmem>>, vector<36x256xf32>
    %cst = arith.constant dense<0.000000e+00> : vector<16x256xf32>
    %5 = tpu.matmul %3, %4, %cst {dimension_numbers = #tpu.dot_dimension_numbers<[1], [0], [0], [1], [0, 0, 1, 1], [], []>} : vector<16x36xf32>, vector<36x256xf32>, vector<16x256xf32> -> vector<16x256xf32>
    %c0_4 = arith.constant 0 : index
    %c0_5 = arith.constant 0 : index
    %6 = vector.load %arg4[%c0_4, %c0_5] : memref<16x1xf32, #tpu.memory_space<vmem>>, vector<16x1xf32>
    %7 = vector.broadcast %6 : vector<16x1xf32> to vector<16x256xf32>
    %8 = arith.addf %5, %7 : vector<16x256xf32>
    %cst_6 = arith.constant 0.000000e+00 : f32
    %9 = vector.broadcast %cst_6 : f32 to vector<16x256xf32>
    %10 = arith.cmpf oge, %8, %9 : vector<16x256xf32>
    %cst_7 = arith.constant 0.00999999977 : f32
    %11 = vector.broadcast %cst_7 : f32 to vector<16x256xf32>
    %12 = arith.mulf %11, %8 : vector<16x256xf32>
    %13 = arith.select %10, %8, %12 : vector<16x256xi1>, vector<16x256xf32>
    %c0_8 = arith.constant 0 : index
    %c0_9 = arith.constant 0 : index
    %c0_10 = arith.constant 0 : index
    %14 = vector.load %arg5[%c0_8, %c0_9, %c0_10] : memref<1x16x256xf32, #tpu.memory_space<vmem>>, vector<1x16x256xf32>
    %15 = vector.shape_cast %14 : vector<1x16x256xf32> to vector<16x256xf32>
    %16 = vector.shape_cast %13 : vector<16x256xf32> to vector<1x16x256xf32>
    tpu.vector_store %arg5[%c0_8, %c0_9, %c0_10], %16 {strides = array<i32>} : memref<1x16x256xf32, #tpu.memory_space<vmem>>, vector<1x16x256xf32>,
    return
  }
  func.func @transform_0(%arg0: i32, %arg1: i32) -> (i32, i32, i32) {
    %c0_i32 = arith.constant 0 : i32
    %c0_i32_0 = arith.constant 0 : i32
    %c0_i32_1 = arith.constant 0 : i32
    return %arg0, %c0_i32, %c0_i32_0 : i32, i32, i32
  }
  func.func @transform_1(%arg0: i32, %arg1: i32) -> (i32, i32) {
    %c0_i32 = arith.constant 0 : i32
    %c0_i32_0 = arith.constant 0 : i32
    return %arg1, %c0_i32 : i32, i32
  }
  func.func @transform_2(%arg0: i32, %arg1: i32) -> (i32, i32) {
    %c0_i32 = arith.constant 0 : i32
    %c0_i32_0 = arith.constant 0 : i32
    return %arg1, %c0_i32 : i32, i32
  }
  func.func @transform_3(%arg0: i32, %arg1: i32) -> (i32, i32, i32) {
    %c0_i32 = arith.constant 0 : i32
    %c0_i32_0 = arith.constant 0 : i32
    return %arg0, %arg1, %c0_i32 : i32, i32, i32
  }
}

</mosaic_0001>

<bundles_post_ra>
// kernel: tpu_custom_call.1
= control target key start
LH: loop header
LB: loop body
LE: loop exit
PB: predicated region body
PF: predicated region fallthrough
CT: control target
= control target key end

     0   :  { %8 = vsyncpa [#allocation5], 0  ;;  %s1240_s0 = inlined_call_operand.vmem [shape: f32[2,4,256], index: 0, kind: input, shape index: {}]   ;;  %s1241_s1 = inlined_call_operand.hbm [shape: f32[16,36], index: 1, kind: input, shape index: {}]   ;;  %s1242_s2 = inlined_call_operand.vmem [shape: f32[16,1], index: 2, kind: input, shape index: {}]   ;;  %s1243_s3 = inlined_call_operand.hbm [shape: f32[2,16,256], index: 3, kind: output, shape index: {}]  }
   0x1   :  { %9 = vsyncpa [#allocation6], 0 }
   0x2   :  { %11 = vsyncpa [#allocation6 + $0x1], 0  ;;  %s1008_s12 = smov 0   ;;  %s1010_s13 = smov 0  }
   0x3   :  { %s1012_s14 = smov 0   ;;  %s1014_s15 = smov 0  }
   0x4   :  { %s1016_s16 = smov 0   ;;  %s1018_s17 = smov 0  }
   0x5 LB: > { %s735_s18 = sadd.s32 4294967295, %s971_s17   ;;  %s736_s19 = sadd.s32 4294967294, %s971_s17   ;;  %s971_s17 = sphi %s1018_s17, %s17_s17   ;;  %s967_s16 = sphi %s1016_s16, %s1261_s16   ;;  %s963_s15 = sphi %s1014_s15, %s1260_s15   ;;  %s959_s14 = sphi %s1012_s14, %s1259_s14   ;;  %s955_s13 = sphi %s1010_s13, %s1258_s13   ;;  %s951_s12 = sphi %s1008_s12, %s1257_s12  }
   0x6   : > { %s29_s20 = sadd.s32 1, %s967_s16  ;;  %s116_s21 = sadd.s32 1, %s959_s14 }
   0x7   : > { %p31_p0 = scmp.ge.s32.totalorder %s29_s20, 2  ;;  %p126_p1 = scmp.ne.s32.totalorder %s959_s14, %s955_s13 }
   0x8   : > { %p127_p2 = scmp.eq.s32.totalorder %s735_s18, 1  ;;  %p132_p3 = scmp.ne.s32.totalorder %s955_s13, %s951_s12 }
   0x9   : > { %s1263_s20 = smov (%p31_p0, %s29_s20), 0  ;;  %p133_p5 = scmp.eq.s32.totalorder %s736_s19, 1 }
   0xa   : > { %p1048_p4 = por %p127_p2, %p126_p1  ;;  %s111_s23 = ssub.s32 %s967_s16, %s1263_s20 }
   0xb   : > { %p737_p6 = scmp.ge.s32.totalorder %s971_s17, 1  ;;  %p114_p7 = scmp.eq.s32.totalorder %s111_s23, 0 }
   0xc   : > { %s1248_s22 = scalar_select %p1048_p4, 1, 0 }
   0xd   : > { %p1055_p8 = por %p133_p5, %p132_p3  ;;  %p140_p9 = scmp.lt.s32.totalorder %s971_s17, 3 }
   0xe   : > { %s1061_s25 = scalar_select %p114_p7, %s959_s14, %s116_s21  }
   0xf   : > { %s1249_s24 = scalar_select %p1055_p8, 1, 0 }
  0x10   : > { %p1063_p10 = pnand %p737_p6, %p140_p9  ;;  %p1067_p11 = scmp.eq.s32.totalorder %s735_s18, 0 }
  0x11   : > { %s973_s28 = smov [#allocation4]   ;;  %s861_s6 = scalar_lea.hbm %s1241_s1, 256 }
  0x12   : > { %s1250_s26 = scalar_select %p1063_p10, 1, 0 }
  0x13   : > { %s1251_s27 = scalar_select %p1067_p11, 1, 0 }
  0x14   : > { %p781_p12 = pneg %p1063_p10  ;;  %s155_s29 = sshll.u32 %s973_s28, 4  ;;  %s156_s29 = int_to_ptr.vmem [resolvable:$true] %s155_s29 }
  0x15   : > { %p862_p0 = scmp.ne.s32.totalorder %s1241_s1, %s861_s6  ;;  %p868_p5 = scmp.lt.u32.totalorder %s861_s6, %s1241_s1 }
  0x16   : > { %p1075_p13 = pnand %p1067_p11, %p781_p12 }
  0x18   : > { %p863_p1 = pneg %p1075_p13 }
  0x1a   : > { %p864_p2 = pnand %p863_p1, %p862_p0 }
  0x1c   : > { %p865_p3 = pneg %p864_p2 }
  0x1e   : > { %p870_p6 = pnand %p868_p5, %p865_p3 }
  0x20   : > { %873 = shalt.err (!%p870_p6)
}
  0x21   : > { %s874_s11 = scalar_lea.vmem %s156_s29, 256  ;;  %p882_p8 = scmp.lt.s32.totalorder %s156_s29, %s156_s29 }
  0x22   : > { %p875_p7 = scmp.ne.s32.totalorder %s156_s29, %s874_s11  ;;  %p883_p4 = scmp.lt.s32.totalorder %s874_s11, %s874_s11 }
  0x24   : > { %p877_p9 = pnand %p875_p7, %p863_p1  ;;  %p884_p11 = por %p883_p4, %p882_p8 }
  0x26   : > { %p878_p12 = pneg %p877_p9 }
  0x28   : > { %p885_p10 = pnand %p884_p11, %p878_p12 }
  0x2a   : > { %888 = shalt.err (!%p885_p10)
}
  0x2b   : > { %s974_s18 = smov 128   ;;  %s975_s19 = smov 8  }
  0x2c   : > { %784 = dma.hbm_to_vmem [thread:$0]  (!%p1075_p13), %s1241_s1, 256, %s156_s29, [#allocation5], %s974_s18, %s974_s18, %s975_s19  }
  0x2d   : > { %p1253_p0 = scmp.ne.s32.totalorder %s1250_s26, 0 }
  0x2e   : > { %v234_v0 = vlaneseq (!%p1253_p0)  ;;  %p1254_p1 = scmp.ne.s32.totalorder (!%p1253_p0), %s1251_s27, 0 }
  0x2f   : > { %188 = sbr.rel (%p1253_p0) target bundleno = 581 (0x245), region = 32 }
  0x36   : > { %942 = dma.done.wait (%p1254_p1), [#allocation5], 256  }
  0x37   : > { %944 = vsyncadd (%p1254_p1), [#allocation5], 4294967040  ;;  %v976_v1 = vmov 0.0   ;;  %v235_v2 = vand.u32 127, %v234_v0  ;;  %p217_p4 = scmp.lt.s32.totalorder %s963_s15, 1  ;;  %s977_s4 = smov 127  }
  0x38   : > { %273 = vst [vmem:[#allocation2] sm:$0xf] %v976_v1  ;;  %274 = vst [vmem:[#allocation2 + $0xc] sm:$0xf] %v976_v1  ;;  %587 = vmatprep.mubr.f32.mxu0 %v976_v1  ;;  %593 = vmatprep.mubr.f32.mxu1 %v976_v1  ;;  %s978_s5 = smov 111   ;;  %s979_s6 = smov 113  }
  0x39   : > { %v236_v3 = vadd.s32 128, %v235_v2  ;;  %v241_v4 = vand.u32 15, %v235_v2  ;;  %s218_s26 = scalar_select %p217_p4, %s963_s15, 1  ;;  %vm361_vm4 = vcmask 1039360   ;;  %vm285_vm5 = vcmask 908288  }
  0x3a   : > { %s980_s7 = smov 15   ;;  %s981_s8 = smov 1   ;;  %vm334_vm6 = vcmask 924672   ;;  %vm377_vm7 = vcmask 7168   ;;  %vm319_vm8 = vcmask 130048   ;;  %vm349_vm9 = vcmask 121856  }
  0x3b   : > { %v248_v5 = vand.u32 15, %v236_v3  ;;  %vm261_vm0 = vcmp.ge.s32.totalorder %v241_v4, 1  ;;  %vm267_vm1 = vcmp.le.s32.totalorder %v241_v4, 14  ;;  %s759_s28 = sshll.u32 %s218_s26, 3  ;;  %s982_s9 = smov 17   ;;  %vm453_vm10 = vcmask 916480  }
  0x3c   : > { %v746_v6 = vsel %vm261_vm0, 1.0, %v976_v1  ;;  %s221_s30 = scalar_lea.vmem %s1240_s0, %s759_s28  ;;  %v748_v8 = vsel %vm267_vm1, 1.0, %v976_v1  ;;  %s983_s10 = smov 16   ;;  %vm300_vm11 = vcmask 138240   ;;  %vm516_vm12 = vcmask 1043456  }
  0x3d   : > { %vm262_vm2 = vcmp.ge.s32.totalorder %v248_v5, 1  ;;  %vm268_vm3 = vcmp.le.s32.totalorder %v248_v5, 14  ;;  %v1106_v10 = vld [vmem:[%s221_s30] sm:$0xff]  ;;  %s984_s11 = smov 112   ;;  %vm509_vm13 = vcmask 293888   ;;  %s214_s26 = sand.u32 1, %s955_s13  }
  0x3e   : > { %v747_v7 = vsel %vm262_vm2, 1.0, %v976_v1  ;;  %v749_v9 = vsel %vm268_vm3, 1.0, %v976_v1  ;;  %276 = vst [vmem:[#allocation2 + $0x4] sm:$0xff] %v1106_v10  ;;  %388 = vst [vmem:[#allocation3 + $0x20] sm:$0xf] %v1106_v10  ;;  %v386_v37 = vcombine.high %v1106_v10, %v1106_v10  ;;  %v445_v4 = vcombine.low %v1106_v10, %v1106_v10  ;;  %s743_s28 = sshll.u32 %s214_s26, 5 }
  0x3f   : > { %v281_v11 = vcombine.low %v746_v6, %v747_v7  ;;  %v330_v12 = vcombine.low %v748_v8, %v749_v9  ;;  %v858_v16 = vld [vmem:[#allocation2 + $0xc] ss:$0 sps:$4 sm:$0xff]   ;;  %v985_v8 = vmov 0   ;;  %v497_v9 = vld [vmem:[%s1242_s2] sm:$0xff]  ;;  %s216_s27 = scalar_lea.vmem [#allocation7], %s743_s28  ;;  %s760_s30 = sshll.u32 %s963_s15, 9 }
  0x40   : > { %v417_v31 = vld [vmem:[#allocation2 + $0xc] sm:$0xf]  ;;  %389 = vst [vmem:[#allocation3 + $0x28] sm:$0xf] %v386_v37  ;;  %855 = vset.pattern.permute.xlu1 %v985_v8  ;;  %854 = vset.pattern.permute.xlu0 %v985_v8  ;;  %s633_s29 = sshll.u32 %s216_s27, 4  ;;  %s1189_s15 = scalar_lea.hbm %s1243_s3, %s760_s30  ;;  %s1184_s29 = int_to_ptr.vmem [resolvable:$true] %s633_s29 }
  0x41   : > { %358 = vrot.lane.b32.xlu1 %v281_v11, %s977_s4  ;;  %282 = vrot.lane.b32.xlu0 %v281_v11, %s978_s5  ;;  %v391_v43 = vld [vmem:[#allocation2 + $0xc] sm:$0xf]  ;;  %p1255_p10 = scmp.ne.s32.totalorder %s1248_s22, 0 }
  0x42   : > { %v461_v5 = vld [vmem:[#allocation2 + $0xc] sm:$0xf] }
  0x43   : > { %v498_v7 = vld [vmem:[%s1242_s2 + $0x8] sm:$0xff] }
  0x45   : > { %331 = vrot.lane.b32.xlu0 %v330_v12, %s979_s6  ;;  %418 = vrot.lane.b32.xlu1 %v281_v11, %s980_s7  ;;  %v856_v13 = vld [vmem:[#allocation2 + $0x8] ss:$0 sps:$4 sm:$0xff]   ;;  %v307_v14 = vld [vmem:[#allocation2] sm:$0xff] }
  0x46   : > { %v311_v15 = vcombine.low %v307_v14, %v307_v14  ;;  %v278_v19 = vld [vmem:[#allocation2 + $0x8] sm:$0xf] }
  0x47   : > { %v327_v26 = vld [vmem:[#allocation2 + $0x8] sm:$0xf] }
  0x48   : > { %v357_v33 = vld [vmem:[#allocation2 + $0x8] sm:$0xf] }
  0x49   : > { %392 = vrot.lane.b32.xlu0 %v330_v12, %s981_s8  ;;  %462 = vrot.lane.b32.xlu1 %v330_v12, %s982_s9 }
  0x4d   : > { %317 = vrot.lane.b32.xlu1 %v856_v13, %s983_s10  ;;  %315 = vrot.lane.b32.xlu0 %v307_v14, %s983_s10 }
  0x51   : > { %313 = vrot.lane.b32.xlu1 %v311_v15, %s983_s10  ;;  %449 = vrot.lane.b32.xlu0 %v1106_v10, %s984_s11 }
  0x55   : > { %451 = vrot.lane.b32.xlu1 %v858_v16, %s984_s11 }
  0xb3   : > { %v359_v17 = vpop.permute.xlu1 %358  ;;  %v283_v18 = vpop.permute.xlu0 %282 }
  0xb4   : > { %v360_v20 = vrot.slane %v359_v17, 4  ;;  %v284_v21 = vrot.slane %v283_v18, 4 }
  0xb6   : > { %v362_v22 = vsel %vm361_vm4, %v360_v20, %v359_v17  ;;  %v290_v23 = vmul.f32 %v284_v21, %v278_v19  ;;  %v286_v28 = vsel %vm285_vm5, %v284_v21, %v283_v18  ;;  %v366_v41 = vmul.f32 %v360_v20, %v357_v33 }
  0xb7   : > { %v365_v24 = vmul.f32 %v362_v22, %v307_v14  ;;  %v332_v25 = vpop.permute.xlu0 %331  ;;  %v419_v27 = vpop.permute.xlu1 %418  ;;  %v289_v34 = vmul.f32 %v307_v14, %v286_v28 }
  0xb8   : > { %v333_v29 = vrot.slane %v332_v25, 4  ;;  %298 = vrot.lane.b32.xlu1 %v290_v23, %s982_s9  ;;  %v420_v30 = vrot.slane %v419_v27, 4  ;;  %v370_v49 = vcombine.low %v366_v41, %v366_v41 }
  0xb9   : > { %373 = vrot.lane.b32.xlu0 %v365_v24, %s981_s8  ;;  %v293_v56 = vcombine.high %v289_v34, %v289_v34  ;;  %v369_v61 = vcombine.low %v365_v24, %v365_v24 }
  0xba   : > { %v339_v32 = vmul.f32 %v333_v29, %v327_v26  ;;  %v335_v38 = vsel %vm334_vm6, %v333_v29, %v332_v25  ;;  %v425_v39 = vmul.f32 %v420_v30, %v417_v31  ;;  %v421_v58 = vsel %vm349_vm9, %v420_v30, %v419_v27 }
  0xbb   : > { %v393_v35 = vpop.permute.xlu0 %392  ;;  %v463_v36 = vpop.permute.xlu1 %462  ;;  %v338_v42 = vmul.f32 %v335_v38, %v307_v14  ;;  %v424_v62 = vmul.f32 %v421_v58, %v1106_v10 }
  0xbc   : > { %347 = vrot.lane.b32.xlu1 %v339_v32, %s980_s7  ;;  %v394_v40 = vrot.slane %v393_v35, 4  ;;  %v464_v53 = vrot.slane %v463_v36, 4 }
  0xbd   : > { %294 = vrot.lane.b32.xlu0 %v289_v34, %s982_s9  ;;  %v342_v63 = vcombine.high %v338_v42, %v338_v42  ;;  %v428_v1 = vcombine.high %v424_v62, %v424_v62 }
  0xbe   : > { %v395_v46 = vsel %vm377_vm7, %v394_v40, %v393_v35  ;;  %v399_v48 = vmul.f32 %v394_v40, %v391_v43  ;;  %v465_v60 = vsel %vm300_vm11, %v464_v53, %v463_v36  ;;  %v469_v6 = vmul.f32 %v464_v53, %v461_v5 }
  0xbf   : > { %v318_v44 = vpop.permute.xlu1 %317  ;;  %v316_v45 = vpop.permute.xlu0 %315  ;;  %v398_v50 = vmul.f32 %v395_v46, %v1106_v10  ;;  %v468_v0 = vmul.f32 %v465_v60, %v1106_v10 }
  0xc0   : > { %433 = vrot.lane.b32.xlu1 %v425_v39, %s979_s6  ;;  %v321_v47 = vsel %vm319_vm8, %v316_v45, %v318_v44  ;;  %v403_v55 = vcombine.low %v399_v48, %v399_v48 }
  0xc1   : > { %343 = vrot.lane.b32.xlu0 %v338_v42, %s980_s7  ;;  %325 = vst [vmem:[#allocation3 + $0x8] sm:$0xf0] %v321_v47  ;;  %v472_v2 = vcombine.high %v468_v0, %v468_v0  ;;  %v402_v3 = vcombine.low %v398_v50, %v398_v50 }
  0xc3   : > { %v314_v51 = vpop.permute.xlu1 %313  ;;  %v1139_v54 = vpop.permute.xlu0 %449 }
  0xc4   : > { %375 = vrot.lane.b32.xlu1 %v370_v49, %s981_s8  ;;  %v320_v52 = vsel %vm319_vm8, %v314_v51, %v316_v45 }
  0xc5   : > { %406 = vrot.lane.b32.xlu0 %v398_v50, %s977_s4  ;;  %324 = vst [vmem:[#allocation3] sm:$0xf0] %v320_v52 }
  0xc7   : > { %v452_v57 = vpop.permute.xlu1 %451 }
  0xc8   : > { %408 = vrot.lane.b32.xlu1 %v403_v55, %s977_s4  ;;  %v455_v59 = vsel %vm453_vm10, %v1139_v54, %v452_v57  ;;  %v485_v55 = vld [vmem:[#allocation4] sm:$0xff] }
  0xc9   : > { %296 = vrot.lane.b32.xlu0 %v293_v56, %s982_s9  ;;  %459 = vst [vmem:[#allocation3 + $0x38] sm:$0xf0] %v455_v59  ;;  %v486_v56 = vld [vmem:[#allocation4 + $0x8] sm:$0xff] }
  0xcc   : > { %371 = vrot.lane.b32.xlu1 %v369_v61, %s981_s8  ;;  %s986_s8 = smov [#allocation7]  }
  0xcd   : > { %345 = vrot.lane.b32.xlu0 %v342_v63, %s980_s7  ;;  %s889_s7 = scalar_lea.vmem %s1184_s29, 512  ;;  %s893_s9 = sshll.u32 %s986_s8, 4  ;;  %s894_s9 = int_to_ptr.vmem [resolvable:$false] %s893_s9 }
  0xce   : > { %p890_p8 = scmp.ne.s32.totalorder %s1184_s29, %s889_s7  ;;  %p896_p2 = scmp.lt.s32.totalorder %s1184_s29, %s894_s9 }
  0xd0   : > { %429 = vrot.lane.b32.xlu1 %v424_v62, %s979_s6  ;;  %p891_p11 = pnand %p890_p8, %p1255_p10 }
  0xd1   : > { %431 = vrot.lane.b32.xlu0 %v428_v1, %s979_s6  ;;  %s1193_s6 = scalar_lea.sflag [#allocation6], %s214_s26 }
  0xd2   : > { %p892_p13 = pneg %p891_p11 }
  0xd4   : > { %475 = vrot.lane.b32.xlu1 %v472_v2, %s978_s5 }
  0xd5   : > { %404 = vrot.lane.b32.xlu0 %v402_v3, %s977_s4 }
  0xd8   : > { %473 = vrot.lane.b32.xlu1 %v468_v0, %s978_s5 }
  0xd9   : > { %447 = vrot.lane.b32.xlu0 %v445_v4, %s984_s11  ;;  %s895_s11 = scalar_lea.vmem %s894_s9, 1024 }
  0xda   : > { %p897_p3 = scmp.lt.s32.totalorder %s895_s11, %s889_s7 }
  0xdc   : > { %506 = vperm.xlu1 %855, %v498_v7   ;;  %p898_p5 = por %p897_p3, %p896_p2 }
  0xdd   : > { %477 = vrot.lane.b32.xlu0 %v469_v6, %s978_s5 }
  0xde   : > { %p899_p6 = pnand %p898_p5, %p892_p13 }
  0xe1   : > { %501 = vperm.xlu0 %854, %v497_v9  }
 0x12a   : > { %v299_v10 = vpop.permute.xlu1 %298 }
 0x12b   : > { %v374_v11 = vpop.permute.xlu0 %373 }
 0x12e   : > { %v348_v12 = vpop.permute.xlu1 %347 }
 0x12f   : > { %v295_v13 = vpop.permute.xlu0 %294 }
 0x132   : > { %v434_v14 = vpop.permute.xlu1 %433 }
 0x133   : > { %v344_v15 = vpop.permute.xlu0 %343 }
 0x136   : > { %v376_v16 = vpop.permute.xlu1 %375 }
 0x137   : > { %v379_v17 = vsel %vm377_vm7, %v374_v11, %v376_v16  ;;  %v407_v18 = vpop.permute.xlu0 %406 }
 0x138   : > { %383 = vst [vmem:[#allocation3 + $0x18] sm:$0xf0] %v379_v17 }
 0x13a   : > { %v409_v19 = vpop.permute.xlu1 %408 }
 0x13b   : > { %v411_v20 = vsel %vm361_vm4, %v407_v18, %v409_v19  ;;  %v297_v21 = vpop.permute.xlu0 %296 }
 0x13c   : > { %415 = vst [vmem:[#allocation3 + $0x28] sm:$0xf0] %v411_v20  ;;  %v301_v22 = vsel %vm300_vm11, %v295_v13, %v297_v21  ;;  %v302_v23 = vsel %vm300_vm11, %v297_v21, %v299_v10 }
 0x13d   : > { %305 = vst [vmem:[#allocation3] sm:$0xf] %v301_v22  ;;  %306 = vst [vmem:[#allocation3 + $0x8] sm:$0xf] %v302_v23 }
 0x13e   : > { %v372_v24 = vpop.permute.xlu1 %371 }
 0x13f   : > { %v378_v25 = vsel %vm377_vm7, %v372_v24, %v374_v11  ;;  %v346_v26 = vpop.permute.xlu0 %345 }
 0x140   : > { %382 = vst [vmem:[#allocation3 + $0x10] sm:$0xf0] %v378_v25  ;;  %v350_v27 = vsel %vm349_vm9, %v344_v15, %v346_v26  ;;  %v351_v28 = vsel %vm349_vm9, %v346_v26, %v348_v12 }
 0x141   : > { %354 = vst [vmem:[#allocation3 + $0x10] sm:$0xf] %v350_v27  ;;  %355 = vst [vmem:[#allocation3 + $0x18] sm:$0xf] %v351_v28 }
 0x142   : > { %v430_v29 = vpop.permute.xlu1 %429 }
 0x143   : > { %v432_v30 = vpop.permute.xlu0 %431  ;;  %v492_v46 = vld [vmem:[#allocation3 + $0x28] sm:$0xff] }
 0x144   : > { %v435_v31 = vsel %vm334_vm6, %v430_v29, %v432_v30  ;;  %v436_v32 = vsel %vm334_vm6, %v432_v30, %v434_v14  ;;  %v488_v35 = vld [vmem:[#allocation3 + $0x8] sm:$0xff]  ;;  %v487_v38 = vld [vmem:[#allocation3] sm:$0xff] }
 0x145   : > { %439 = vst [vmem:[#allocation3 + $0x30] sm:$0xf] %v435_v31  ;;  %440 = vst [vmem:[#allocation3 + $0x38] sm:$0xf] %v436_v32 }
 0x146   : > { %v476_v33 = vpop.permute.xlu1 %475 }
 0x147   : > { %v405_v34 = vpop.permute.xlu0 %404 }
 0x148   : > { %v410_v36 = vsel %vm361_vm4, %v405_v34, %v407_v18  ;;  %v490_v37 = vld [vmem:[#allocation3 + $0x18] sm:$0xff]  ;;  %v489_v39 = vld [vmem:[#allocation3 + $0x10] sm:$0xff] }
 0x149   : > { %414 = vst [vmem:[#allocation3 + $0x20] sm:$0xf0] %v410_v36  ;;  %v761_v40 = vpack.c.bf16 %v490_v37, %v488_v35  ;;  %v763_v41 = vpack.c.bf16 %v489_v39, %v487_v38 }
 0x14a   : > { %v474_v42 = vpop.permute.xlu1 %473 }
 0x14b   : > { %v479_v43 = vsel %vm285_vm5, %v474_v42, %v476_v33  ;;  %762 = vmatprep.subr.bf16.mxu0 %v761_v40  ;;  %769 = vmatprep.subr.bf16.mxu1 %v761_v40  ;;  %v448_v44 = vpop.permute.xlu0 %447 }
 0x14c   : > { %483 = vst [vmem:[#allocation3 + $0x40] sm:$0xf] %v479_v43  ;;  %v454_v45 = vsel %vm453_vm10, %v448_v44, %v1139_v54  ;;  %764 = vmatpush1.bf16.msra.mxu0 %v763_v41  ;;  %772 = vmatpush1.bf16.msra.mxu1 %v763_v41  ;;  %v494_v47 = vld [vmem:[#allocation3 + $0x38] sm:$0xff] }
 0x14d   : > { %458 = vst [vmem:[#allocation3 + $0x30] sm:$0xf0] %v454_v45  ;;  %v765_v48 = vpack.c.bf16 %v494_v47, %v492_v46 }
 0x14f   : > { %766 = vmatprep.subr.bf16.mxu0 %v765_v48  ;;  %770 = vmatprep.subr.bf16.mxu1 %v765_v48  ;;  %v478_v49 = vpop.permute.xlu0 %477 }
 0x150   : > { %v480_v50 = vsel %vm285_vm5, %v476_v33, %v478_v49  ;;  %v491_v51 = vld [vmem:[#allocation3 + $0x20] sm:$0xff] }
 0x151   : > { %484 = vst [vmem:[#allocation3 + $0x48] sm:$0xf] %v480_v50 }
 0x153   : > { %v495_v57 = vld [vmem:[#allocation3 + $0x40] sm:$0xf] }
 0x154   : > { %v493_v52 = vld [vmem:[#allocation3 + $0x30] sm:$0xff] }
 0x155   : > { %v767_v53 = vpack.c.bf16 %v493_v52, %v491_v51 }
 0x157   : > { %768 = vmatpush1.bf16.msra.mxu0 %v767_v53  ;;  %773 = vmatpush1.bf16.msra.mxu1 %v767_v53 }
 0x158   : > { %v496_v54 = vld [vmem:[#allocation3 + $0x48] sm:$0xf] }
 0x159   : > { %750 = vmatprep.subr.msk.mxu0 %vm516_vm12, %v496_v54  ;;  %771 = vmatprep.subr.msk.mxu1 %vm516_vm12, %v496_v54 }
 0x15b   : > { %751 = vmatpush1.msk.msra.mxu0 %vm516_vm12, %v495_v57  ;;  %774 = vmatpush1.msk.msra.mxu1 %vm516_vm12, %v495_v57  ;;  %v507_v58 = vpop.permute.xlu1 %506 }
 0x15c   : > { %752 = vmatmul.mubr.msk.f32.vlgmr.msra.gmra.mrb[0].mxu0 %vm509_vm13, %v485_v55  ;;  %753 = vmatmul.mubr.msk.f32.vlgmr.msra.gmra.mrb[0].mxu1 %vm509_vm13, %v486_v56 }
 0x160   : > { %v502_v59 = vpop.permute.xlu0 %501 }
 0x22f   : > { %v589_v60 = vpop.f32.mrb[0].mxu0  ;;  %v595_v61 = vpop.f32.mrb[0].mxu1 }
 0x230   : > { %v596_v62 = vadd.f32 %v595_v61, %v507_v58  ;;  %v590_v63 = vadd.f32 %v589_v60, %v502_v59  ;;  %v591_v0 = vpop.f32.mrb[1].mxu0  ;;  %v597_v1 = vpop.f32.mrb[1].mxu1 }
 0x231   : > { %v592_v2 = vadd.f32 %v591_v0, %v502_v59  ;;  %v598_v3 = vadd.f32 %v597_v1, %v507_v58 }
 0x232   : > { %vm602_vm14 = vcmp.ge.f32.partialorder %v596_v62, 0.0  ;;  %v606_v4 = vmul.f32 0.01, %v596_v62  ;;  %vm600_vm15 = vcmp.ge.f32.partialorder %v590_v63, 0.0  ;;  %v604_v5 = vmul.f32 0.01, %v590_v63 }
 0x233   : > { %vm601_vm0 = vcmp.ge.f32.partialorder %v592_v2, 0.0  ;;  %v605_v6 = vmul.f32 0.01, %v592_v2  ;;  %vm603_vm1 = vcmp.ge.f32.partialorder %v598_v3, 0.0  ;;  %v607_v7 = vmul.f32 0.01, %v598_v3 }
 0x234   : > { %v610_v8 = vsel %vm602_vm14, %v596_v62, %v606_v4  ;;  %v608_v9 = vsel %vm600_vm15, %v590_v63, %v604_v5 }
 0x235   : > { %614 = vst [vmem:[%s216_s27 + $0x10] sm:$0xff] %v610_v8  ;;  %612 = vst [vmem:[%s216_s27] sm:$0xff] %v608_v9  ;;  %v609_v10 = vsel %vm601_vm0, %v592_v2, %v605_v6  ;;  %v611_v11 = vsel %vm603_vm1, %v598_v3, %v607_v7 }
 0x236   : > { %613 = vst [vmem:[%s216_s27 + $0x8] sm:$0xff] %v609_v10  ;;  %615 = vst [vmem:[%s216_s27 + $0x18] sm:$0xff] %v611_v11 }
 0x237   : > { %902 = shalt.err (!%p899_p6)
}
 0x238   : > { %s903_s18 = scalar_lea.hbm %s1189_s15, 512  ;;  %s907_s23 = scalar_lea.hbm %s1243_s3, 1024 }
 0x239   : > { %p904_p7 = scmp.ne.s32.totalorder %s1189_s15, %s903_s18  ;;  %p908_p0 = scmp.lt.u32.totalorder %s1189_s15, %s1243_s3 }
 0x23a   : > { %p909_p1 = scmp.lt.u32.totalorder %s907_s23, %s903_s18  ;;  %p911_p8 = scmp.lt.u32.totalorder %s903_s18, %s1189_s15 }
 0x23b   : > { %p905_p9 = pnand %p904_p7, %p1255_p10 }
 0x23c   : > { %p910_p4 = por %p909_p1, %p908_p0 }
 0x23d   : > { %p906_p12 = pneg %p905_p9 }
 0x23e   : > { %p912_p11 = por %p911_p8, %p910_p4 }
 0x240   : > { %p913_p13 = pnand %p912_p11, %p906_p12 }
 0x242   : > { %916 = shalt.err (!%p913_p13)
}
 0x243   : > { %s987_s27 = smov 256  }
 0x244   : > { %779 = dma.vmem_to_hbm [thread:$0]  (%p1255_p10), %s1184_s29, 512, %s1189_s15, %s1193_s6, %s987_s27, %s987_s27, %s983_s10  }
 0x245 PF: > { %p791_p2 = scmp.ge.s32.totalorder %s971_s17, 2  ;;  %s648_s30 = sand.u32 1, %s951_s12  }
 0x246   : > { %p1256_p3 = scmp.ne.s32.totalorder %s1249_s24, 0  ;;  %s649_s4 = scalar_lea.sflag [#allocation6], %s648_s30 }
 0x248   : > { %p786_p5 = pnand %p791_p2, %p1256_p3 }
 0x24a   : > { %946 = dma.done.wait (!%p786_p5), %s649_s4, 512  }
 0x24b   : > { %948 = vsyncadd (!%p786_p5), %s649_s4, 4294966784  ;;  %s17_s17 = sadd.s32 1, %s971_s17   ;;  %s1257_s12 = smov %s955_s13 }
 0x24c   : > { %p14_p6 = scmp.ge.s32.totalorder %s17_s17, 4   ;;  %s1258_s13 = smov %s959_s14 }
 0x24d   : > { %s1259_s14 = smov %s1061_s25  ;;  %s1260_s15 = smov %s967_s16 }
 0x24e   : > { %s1261_s16 = smov %s1263_s20  ;;  %16 = sbr.rel (!%p14_p6) target bundleno = 5 (0x5), region = 80 }
 0x255   :  { %654 = vsyncpa [#allocation5], 1 }
 0x256   :  { %656 = vsyncpa [#allocation5 + $0x1], 1 }
 0x257   :  { %657 = vsyncpa [#allocation6], 1 }
 0x258   :  { %659 = vsyncpa [#allocation6 + $0x1], 1 }

</bundles_post_ra>
